<compile_context>
chip_gen: v7x
topology: tpu7x:2x2x1
jax: 0.10.0
libtpu: 0.0.40
codegen_flags: <defaults>
</compile_context>

<pallas_src>
import functools

import jax
import jax.numpy as jnp
from jax import lax
from jax.experimental import pallas as pl
from jax.experimental.pallas import tpu as pltpu


def _round_up(x: int, m: int) -> int:
    return ((x + m - 1) // m) * m


def _vmem_capacity_bytes() -> int:
    try:
        return int(pltpu.get_tpu_info().vmem_capacity_bytes)
    except Exception:
        return 64 * 1024 * 1024  # conservative default (v7x per-TensorCore VMEM)


def _mod_mse_tile_kernel(out_ref, lab_ref, psum_ref,
                         m_acc, sxx_acc, sxy_acc, syy_acc,
                         *, n_rows, n_cols):
    """Grid step (i, k): (b, c)-row chunk i, spatial chunk k.

    Accumulates per-row running max and three weighted partial sums across spatial
    chunks; at the last chunk combines them and writes one f32 partial sum per row
    chunk.  Global mean + prior regulariser are finished in the wrapper.
    """
    i = pl.program_id(0)            # row-chunk index ("parallel")
    k = pl.program_id(1)            # spatial-chunk index ("arbitrary", innermost)
    tb, thw = out_ref.shape

    @pl.when(k == 0)
    def _init():
        m_acc[...] = jnp.full_like(m_acc, -jnp.inf)
        sxx_acc[...] = jnp.zeros_like(sxx_acc)
        sxy_acc[...] = jnp.zeros_like(sxy_acc)
        syy_acc[...] = jnp.zeros_like(syy_acc)

    x = out_ref[...].astype(jnp.float32)     # (TB, THW)
    y = lab_ref[...].astype(jnp.float32)     # (TB, THW)
    x_for_max = x

    # Edge-block masking; only emitted when the block does not divide the array.
    masks = []
    if n_rows % tb != 0:
        row_ids = i * tb + lax.broadcasted_iota(jnp.int32, (tb, thw), 0)
        masks.append(row_ids < n_rows)
    if n_cols % thw != 0:
        col_ids = k * thw + lax.broadcasted_iota(jnp.int32, (tb, thw), 1)
        masks.append(col_ids < n_cols)
    if masks:
        valid = masks[0] if len(masks) == 1 else masks[0] & masks[1]
        x_for_max = jnp.where(valid, x, -jnp.inf)
        x = jnp.where(valid, x, 0.0)
        y = jnp.where(valid, y, 0.0)

    # Per-row running max over the spatial axis.
    m_acc[...] = jnp.maximum(m_acc[...],
                             jnp.max(x_for_max, axis=-1, keepdims=True))

    # w = 1/(1.1 - y) on the EUP (approximate reciprocal; EUP slot is otherwise idle).
    w = pl.reciprocal(1.1 - y, approx=True)
    xw = x * w
    sxx_acc[...] += jnp.sum(x * xw, axis=-1, keepdims=True)
    sxy_acc[...] += jnp.sum(y * xw, axis=-1, keepdims=True)
    syy_acc[...] += jnp.sum(y * y * w, axis=-1, keepdims=True)

    @pl.when(k == pl.num_programs(1) - 1)
    def _finalize():
        inv_m = 1.0 / m_acc[...]   # exact: one reciprocal per (b, c) row, negligible
        per_row = (sxx_acc[...] * inv_m - 2.0 * sxy_acc[...]) * inv_m + syy_acc[...]
        # Masked (padded) rows contribute exactly 0: all their partial sums are 0.
        psum_ref[...] = jnp.sum(per_row, keepdims=True)      # (1, 1) scalar per chunk


def _mod_mse_loss_jnp(output, label, prior):
    """Fused jnp path for tiny problems (same semantics as the PyTorch forward)."""
    out = output.astype(jnp.float32)
    lab = label.astype(jnp.float32)
    m = jnp.max(out, axis=(2, 3), keepdims=True)
    p = prior.astype(jnp.float32)
    reg = (1.0 / float(prior.shape[0] * prior.shape[1])) * (1.0 - p) ** 2
    return jnp.mean((out / m - lab) ** 2 / (1.0 - lab + 0.1)) + jnp.sum(reg)


def mod_mse_loss(output, label, prior, shape_r_gt=None, shape_c_gt=None, *,
                 block_rows=None, block_cols=None, cast_inputs_to=None,
                 min_pallas_bytes=1 << 20):
    """Pallas implementation of ModMSELoss.forward.

    output, label: (B, C, H, W) with H == shape_r_gt, W == shape_c_gt
    prior:         (P0, P1) (any rank >= 2; matches torch's prior.shape[0]*shape[1])
    Returns a scalar f32 loss.
    """
    B, C, H, W = output.shape
    if shape_r_gt is None:
        shape_r_gt = H
    if shape_c_gt is None:
        shape_c_gt = W
    assert (H, W) == (shape_r_gt, shape_c_gt), "expand() requires matching spatial dims"
    assert label.shape == output.shape

    # Tiny problems: pallas_call fixed overhead dominates; let XLA fuse it instead.
    in_bytes = output.size * output.dtype.itemsize + label.size * label.dtype.itemsize
    if in_bytes < min_pallas_bytes:
        return _mod_mse_loss_jnp(output, label, prior)

    if cast_inputs_to is not None:
        # Only a win when the cast fuses with the producer (or inputs are already
        # narrow); the kernel accepts any input dtype and computes in f32.
        output = output.astype(cast_inputs_to)
        label = label.astype(cast_inputs_to)

    BC, HW = B * C, H * W
    out2 = output.reshape(BC, HW)   # lane-dense: spatial dims on the 128-lane axis
    lab2 = label.reshape(BC, HW)

    # ---- generation-aware tile sizing ------------------------------------------
    itemsize = jnp.dtype(out2.dtype).itemsize
    vmem_cap = _vmem_capacity_bytes()
    # Cap double-buffered footprint (2 inputs x 2 pipeline buffers) at ~1/4 of
    # physical VMEM -> per-buffer budget of vmem/16 (8 MiB v5e/v6e, 4 MiB v7x).
    per_buf = max(512 * 1024, vmem_cap // 16)

    if block_cols is not None:
        thw = int(block_cols)                     # caller override (multiple of 128)
    elif HW <= 128 or 8 * HW * itemsize <= per_buf:
        thw = HW                                  # whole rows fit comfortably
    else:
        thw = min(_round_up(HW, 128),
                  max(128, (per_buf // (8 * itemsize)) // 128 * 128))

    if block_rows is not None:
        tb = int(block_rows)                      # caller override (multiple of 8)
    else:
        tb = max(8, (per_buf // max(1, thw * itemsize)) // 8 * 8)
        tb = min(tb, _round_up(BC, 8))
        # Prefer >= 2 row chunks so v7x's two TensorCores both get work.
        if BC > 8 and pl.cdiv(BC, tb) < 2:
            tb = max(8, _round_up(pl.cdiv(BC, 2), 8))

    n_row_chunks = pl.cdiv(BC, tb)
    n_hw_chunks = pl.cdiv(HW, thw)

    psums = pl.pallas_call(
        functools.partial(_mod_mse_tile_kernel, n_rows=BC, n_cols=HW),
        out_shape=jax.ShapeDtypeStruct((n_row_chunks, 1, 1), jnp.float32),
        grid_spec=pltpu.PrefetchScalarGridSpec(
            num_scalar_prefetch=0,
            grid=(n_row_chunks, n_hw_chunks),
            in_specs=[
                pl.BlockSpec((tb, thw), lambda i, k: (i, k)),   # "output" rows
                pl.BlockSpec((tb, thw), lambda i, k: (i, k)),   # "label" rows
            ],
            out_specs=pl.BlockSpec((None, 1, 1), lambda i, k: (i, 0, 0)),
            scratch_shapes=[pltpu.VMEM((tb, 1), jnp.float32) for _ in range(4)],
        ),
        compiler_params=pltpu.CompilerParams(
            dimension_semantics=("parallel", "arbitrary"),
            vmem_limit_bytes=int(min(vmem_cap // 2, 96 * 1024 * 1024)),
        ),
    )(out2, lab2)

    # Finish the mean and the (trivial) prior regulariser with plain JAX.
    prior_f32 = prior.astype(jnp.float32)
    reg = jnp.sum((1.0 - prior_f32) ** 2) / float(prior.shape[0] * prior.shape[1])
    return jnp.sum(psums) / float(BC * HW) + reg


if __name__ == "__main__":
    def ref_loss(output, label, prior):
        out = output.astype(jnp.float32)
        lab = label.astype(jnp.float32)
        m = jnp.max(out, axis=(2, 3), keepdims=True)
        reg = (1.0 / (prior.shape[0] * prior.shape[1])) * (1.0 - prior.astype(jnp.float32)) ** 2
        return jnp.mean((out / m - lab) ** 2 / (1.0 - lab + 0.1)) + jnp.sum(reg)

    def check(got, want, rtol):
        got = float(jax.block_until_ready(got))
        want = float(want)
        assert abs(got - want) <= rtol * max(1.0, abs(want)), (got, want)

    keys = jax.random.split(jax.random.PRNGKey(0), 8)

    # Case 1: small f32 demo shape, forced onto the Pallas path.
    out1 = jax.random.uniform(keys[0], (2, 4, 16, 16), jnp.float32) + 0.1
    lab1 = jax.random.uniform(keys[1], (2, 4, 16, 16), jnp.float32)
    pri1 = jax.random.uniform(keys[2], (16, 16), jnp.float32)
    # 5e-3 tolerance covers the EUP approximate-reciprocal error with margin.
    check(mod_mse_loss(out1, lab1, pri1, 16, 16, min_pallas_bytes=0),
          ref_loss(out1, lab1, pri1), 5e-3)

    # Case 2: BC=15 (not a multiple of 8) and HW=4536 (not a multiple of 128) with
    # small block overrides -> exercises row/lane edge masking and the HW-chunked
    # running-max / partial-sum accumulator path (grid = (2, 5)).
    out2 = jax.random.uniform(keys[3], (3, 5, 63, 72), jnp.float32) + 0.1
    lab2 = jax.random.uniform(keys[4], (3, 5, 63, 72), jnp.float32)
    pri2 = jax.random.uniform(keys[5], (8, 8), jnp.float32)
    check(mod_mse_loss(out2, lab2, pri2, 63, 72,
                       block_rows=8, block_cols=1024, min_pallas_bytes=0),
          ref_loss(out2, lab2, pri2), 5e-3)

    # Case 3: native bf16 inputs (halved HBM traffic), f32 math inside the kernel.
    out3 = (jax.random.uniform(keys[6], (2, 4, 32, 32), jnp.float32) + 0.1).astype(jnp.bfloat16)
    lab3 = jax.random.uniform(keys[7], (2, 4, 32, 32), jnp.float32).astype(jnp.bfloat16)
    check(mod_mse_loss(out3, lab3, pri1, 32, 32, min_pallas_bytes=0),
          ref_loss(out3, lab3, pri1), 5e-3)

    # Case 4: default auto path for tiny inputs (short-circuits to fused jnp).
    check(mod_mse_loss(out1, lab1, pri1, 16, 16),
          ref_loss(out1, lab1, pri1), 1e-5)

    print("KERNEL_OK")
</pallas_src>

<mosaic_0001>
module attributes {stable_mosaic.version = 11 : i64} {
  func.func @_mod_mse_tile_kernel(%arg0: i32, %arg1: i32, %arg2: memref<8x256xf32, #tpu.memory_space<vmem>>, %arg3: memref<8x256xf32, #tpu.memory_space<vmem>>, %arg4: memref<1x1x1xf32, #tpu.memory_space<vmem>>, %arg5: memref<8x1xf32, #tpu.memory_space<vmem>>, %arg6: memref<8x1xf32, #tpu.memory_space<vmem>>, %arg7: memref<8x1xf32, #tpu.memory_space<vmem>>, %arg8: memref<8x1xf32, #tpu.memory_space<vmem>>) attributes {dimension_semantics = [#tpu.dimension_semantics<parallel>, #tpu.dimension_semantics<arbitrary>], iteration_bounds = array<i64: 1, 1>, scalar_prefetch = 0 : i64, scratch_operands = 4 : i64, tpu.core_type = #tpu.core_type<tc>, window_params = [{transform_indices = @transform_0, window_bounds = array<i64: 8, 256>}, {transform_indices = @transform_1, window_bounds = array<i64: 8, 256>}, {transform_indices = @transform_2, window_bounds = array<i64: 1, 1, 1>}]} {
    %c0_i32 = arith.constant 0 : i32
    %0 = arith.cmpi eq, %arg1, %c0_i32 : i32
    %1 = arith.extui %0 : i1 to i32
    %c0_i32_0 = arith.constant 0 : i32
    %2 = arith.cmpi ne, %1, %c0_i32_0 : i32
    scf.if %2 {
      %cst_26 = arith.constant 0xFF800000 : f32
      %36 = vector.broadcast %cst_26 : f32 to vector<8x1xf32>
      %c0_27 = arith.constant 0 : index
      %c0_28 = arith.constant 0 : index
      %37 = vector.load %arg5[%c0_27, %c0_28] : memref<8x1xf32, #tpu.memory_space<vmem>>, vector<8x1xf32>
      tpu.vector_store %arg5[%c0_27, %c0_28], %36 {strides = array<i32>} : memref<8x1xf32, #tpu.memory_space<vmem>>, vector<8x1xf32>,
      %cst_29 = arith.constant 0.000000e+00 : f32
      %38 = vector.broadcast %cst_29 : f32 to vector<8x1xf32>
      %c0_30 = arith.constant 0 : index
      %c0_31 = arith.constant 0 : index
      %39 = vector.load %arg6[%c0_30, %c0_31] : memref<8x1xf32, #tpu.memory_space<vmem>>, vector<8x1xf32>
      tpu.vector_store %arg6[%c0_30, %c0_31], %38 {strides = array<i32>} : memref<8x1xf32, #tpu.memory_space<vmem>>, vector<8x1xf32>,
      %cst_32 = arith.constant 0.000000e+00 : f32
      %40 = vector.broadcast %cst_32 : f32 to vector<8x1xf32>
      %c0_33 = arith.constant 0 : index
      %c0_34 = arith.constant 0 : index
      %41 = vector.load %arg7[%c0_33, %c0_34] : memref<8x1xf32, #tpu.memory_space<vmem>>, vector<8x1xf32>
      tpu.vector_store %arg7[%c0_33, %c0_34], %40 {strides = array<i32>} : memref<8x1xf32, #tpu.memory_space<vmem>>, vector<8x1xf32>,
      %cst_35 = arith.constant 0.000000e+00 : f32
      %42 = vector.broadcast %cst_35 : f32 to vector<8x1xf32>
      %c0_36 = arith.constant 0 : index
      %c0_37 = arith.constant 0 : index
      %43 = vector.load %arg8[%c0_36, %c0_37] : memref<8x1xf32, #tpu.memory_space<vmem>>, vector<8x1xf32>
      tpu.vector_store %arg8[%c0_36, %c0_37], %42 {strides = array<i32>} : memref<8x1xf32, #tpu.memory_space<vmem>>, vector<8x1xf32>,
    } else {
    }
    %c0 = arith.constant 0 : index
    %c0_1 = arith.constant 0 : index
    %3 = vector.load %arg2[%c0, %c0_1] : memref<8x256xf32, #tpu.memory_space<vmem>>, vector<8x256xf32>
    %c0_2 = arith.constant 0 : index
    %c0_3 = arith.constant 0 : index
    %4 = vector.load %arg3[%c0_2, %c0_3] : memref<8x256xf32, #tpu.memory_space<vmem>>, vector<8x256xf32>
    %c0_4 = arith.constant 0 : index
    %c0_5 = arith.constant 0 : index
    %5 = vector.load %arg5[%c0_4, %c0_5] : memref<8x1xf32, #tpu.memory_space<vmem>>, vector<8x1xf32>
    %cst = arith.constant dense<0xFF800000> : vector<8xf32>
    %6 = vector.multi_reduction <maximumf>, %3, %cst [1] : vector<8x256xf32> to vector<8xf32>
    %7 = vector.shape_cast %6 : vector<8xf32> to vector<8x1xf32>
    %8 = arith.maximumf %5, %7 : vector<8x1xf32>
    %c0_6 = arith.constant 0 : index
    %c0_7 = arith.constant 0 : index
    %9 = vector.load %arg5[%c0_6, %c0_7] : memref<8x1xf32, #tpu.memory_space<vmem>>, vector<8x1xf32>
    tpu.vector_store %arg5[%c0_6, %c0_7], %8 {strides = array<i32>} : memref<8x1xf32, #tpu.memory_space<vmem>>, vector<8x1xf32>,
    %cst_8 = arith.constant 1.100000e+00 : f32
    %10 = vector.broadcast %cst_8 : f32 to vector<8x256xf32>
    %11 = arith.subf %10, %4 : vector<8x256xf32>
    %12 = tpu.reciprocal %11 {approx = true} : vector<8x256xf32> -> vector<8x256xf32>
    %13 = arith.mulf %3, %12 : vector<8x256xf32>
    %c0_9 = arith.constant 0 : index
    %c0_10 = arith.constant 0 : index
    %14 = vector.load %arg6[%c0_9, %c0_10] : memref<8x1xf32, #tpu.memory_space<vmem>>, vector<8x1xf32>
    %15 = arith.mulf %3, %13 : vector<8x256xf32>
    %cst_11 = arith.constant dense<0.000000e+00> : vector<8xf32>
    %16 = vector.multi_reduction <add>, %15, %cst_11 [1] : vector<8x256xf32> to vector<8xf32>
    %17 = vector.shape_cast %16 : vector<8xf32> to vector<8x1xf32>
    %18 = arith.addf %14, %17 : vector<8x1xf32>
    %c0_12 = arith.constant 0 : index
    %c0_13 = arith.constant 0 : index
    %19 = vector.load %arg6[%c0_12, %c0_13] : memref<8x1xf32, #tpu.memory_space<vmem>>, vector<8x1xf32>
    tpu.vector_store %arg6[%c0_12, %c0_13], %18 {strides = array<i32>} : memref<8x1xf32, #tpu.memory_space<vmem>>, vector<8x1xf32>,
    %c0_14 = arith.constant 0 : index
    %c0_15 = arith.constant 0 : index
    %20 = vector.load %arg7[%c0_14, %c0_15] : memref<8x1xf32, #tpu.memory_space<vmem>>, vector<8x1xf32>
    %21 = arith.mulf %4, %13 : vector<8x256xf32>
    %cst_16 = arith.constant dense<0.000000e+00> : vector<8xf32>
    %22 = vector.multi_reduction <add>, %21, %cst_16 [1] : vector<8x256xf32> to vector<8xf32>
    %23 = vector.shape_cast %22 : vector<8xf32> to vector<8x1xf32>
    %24 = arith.addf %20, %23 : vector<8x1xf32>
    %c0_17 = arith.constant 0 : index
    %c0_18 = arith.constant 0 : index
    %25 = vector.load %arg7[%c0_17, %c0_18] : memref<8x1xf32, #tpu.memory_space<vmem>>, vector<8x1xf32>
    tpu.vector_store %arg7[%c0_17, %c0_18], %24 {strides = array<i32>} : memref<8x1xf32, #tpu.memory_space<vmem>>, vector<8x1xf32>,
    %c0_19 = arith.constant 0 : index
    %c0_20 = arith.constant 0 : index
    %26 = vector.load %arg8[%c0_19, %c0_20] : memref<8x1xf32, #tpu.memory_space<vmem>>, vector<8x1xf32>
    %27 = arith.mulf %4, %4 : vector<8x256xf32>
    %28 = arith.mulf %27, %12 : vector<8x256xf32>
    %cst_21 = arith.constant dense<0.000000e+00> : vector<8xf32>
    %29 = vector.multi_reduction <add>, %28, %cst_21 [1] : vector<8x256xf32> to vector<8xf32>
    %30 = vector.shape_cast %29 : vector<8xf32> to vector<8x1xf32>
    %31 = arith.addf %26, %30 : vector<8x1xf32>
    %c0_22 = arith.constant 0 : index
    %c0_23 = arith.constant 0 : index
    %32 = vector.load %arg8[%c0_22, %c0_23] : memref<8x1xf32, #tpu.memory_space<vmem>>, vector<8x1xf32>
    tpu.vector_store %arg8[%c0_22, %c0_23], %31 {strides = array<i32>} : memref<8x1xf32, #tpu.memory_space<vmem>>, vector<8x1xf32>,
    %c0_i32_24 = arith.constant 0 : i32
    %33 = arith.cmpi eq, %arg1, %c0_i32_24 : i32
    %34 = arith.extui %33 : i1 to i32
    %c0_i32_25 = arith.constant 0 : i32
    %35 = arith.cmpi ne, %34, %c0_i32_25 : i32
    scf.if %35 {
      %c0_26 = arith.constant 0 : index
      %c0_27 = arith.constant 0 : index
      %36 = vector.load %arg5[%c0_26, %c0_27] : memref<8x1xf32, #tpu.memory_space<vmem>>, vector<8x1xf32>
      %cst_28 = arith.constant 1.000000e+00 : f32
      %37 = vector.broadcast %cst_28 : f32 to vector<8x1xf32>
      %38 = arith.divf %37, %36 : vector<8x1xf32>
      %c0_29 = arith.constant 0 : index
      %c0_30 = arith.constant 0 : index
      %39 = vector.load %arg6[%c0_29, %c0_30] : memref<8x1xf32, #tpu.memory_space<vmem>>, vector<8x1xf32>
      %40 = arith.mulf %39, %38 : vector<8x1xf32>
      %c0_31 = arith.constant 0 : index
      %c0_32 = arith.constant 0 : index
      %41 = vector.load %arg7[%c0_31, %c0_32] : memref<8x1xf32, #tpu.memory_space<vmem>>, vector<8x1xf32>
      %cst_33 = arith.constant 2.000000e+00 : f32
      %42 = vector.broadcast %cst_33 : f32 to vector<8x1xf32>
      %43 = arith.mulf %42, %41 : vector<8x1xf32>
      %44 = arith.subf %40, %43 : vector<8x1xf32>
      %45 = arith.mulf %44, %38 : vector<8x1xf32>
      %c0_34 = arith.constant 0 : index
      %c0_35 = arith.constant 0 : index
      %46 = vector.load %arg8[%c0_34, %c0_35] : memref<8x1xf32, #tpu.memory_space<vmem>>, vector<8x1xf32>
      %47 = arith.addf %45, %46 : vector<8x1xf32>
      %48 = vector.shape_cast %47 : vector<8x1xf32> to vector<1x8x1xf32>
      %cst_36 = arith.constant dense<0.000000e+00> : vector<1xf32>
      %49 = vector.multi_reduction <add>, %48, %cst_36 [1, 2] : vector<1x8x1xf32> to vector<1xf32>
      %50 = vector.shape_cast %49 : vector<1xf32> to vector<1x1x1xf32>
      %51 = vector.extract %50[0, 0, 0] : f32 from vector<1x1x1xf32>
      %52 = vector.broadcast %51 : f32 to vector<1x1xf32>
      %c0_37 = arith.constant 0 : index
      %c0_38 = arith.constant 0 : index
      %c0_39 = arith.constant 0 : index
      %53 = vector.load %arg4[%c0_37, %c0_38, %c0_39] : memref<1x1x1xf32, #tpu.memory_space<vmem>>, vector<1x1x1xf32>
      %54 = vector.shape_cast %53 : vector<1x1x1xf32> to vector<1x1xf32>
      %55 = vector.shape_cast %52 : vector<1x1xf32> to vector<1x1x1xf32>
      tpu.vector_store %arg4[%c0_37, %c0_38, %c0_39], %55 {strides = array<i32>} : memref<1x1x1xf32, #tpu.memory_space<vmem>>, vector<1x1x1xf32>,
    } else {
    }
    return
  }
  func.func @transform_0(%arg0: i32, %arg1: i32) -> (i32, i32) {
    %c0_i32 = arith.constant 0 : i32
    return %arg0, %arg1 : i32, i32
  }
  func.func @transform_1(%arg0: i32, %arg1: i32) -> (i32, i32) {
    %c0_i32 = arith.constant 0 : i32
    return %arg0, %arg1 : i32, i32
  }
  func.func @transform_2(%arg0: i32, %arg1: i32) -> (i32, i32, i32) {
    %c0_i32 = arith.constant 0 : i32
    %c0_i32_0 = arith.constant 0 : i32
    %c0_i32_1 = arith.constant 0 : i32
    return %arg0, %c0_i32, %c0_i32_0 : i32, i32, i32
  }
}

</mosaic_0001>

<bundles_post_ra>
// kernel: tpu_custom_call.1
= control target key start
LH: loop header
LB: loop body
LE: loop exit
PB: predicated region body
PF: predicated region fallthrough
CT: control target
= control target key end

     0   :  { %7 = vsyncpa [#allocation7], 0  ;;  %s281_s0 = inlined_call_operand.hbm [shape: f32[8,256], index: 0, kind: input, shape index: {}]   ;;  %s282_s1 = inlined_call_operand.hbm [shape: f32[8,256], index: 1, kind: input, shape index: {}]   ;;  %s283_s2 = inlined_call_operand.hbm [shape: f32[1,1,1], index: 2, kind: output, shape index: {}]  }
   0x1   :  { %8 = vsyncpa [#allocation10], 0 }
   0x2   :  { %9 = vsyncpa [#allocation8], 0  ;;  %s216_s9 = smov [#allocation6]   ;;  %s217_s11 = smov [#allocation9]  }
   0x3   :  { %s16_s10 = sshll.u32 %s216_s9, 4  ;;  %s26_s12 = sshll.u32 %s217_s11, 4  ;;  %s17_s10 = int_to_ptr.vmem [resolvable:$true] %s16_s10  ;;  %s27_s12 = int_to_ptr.vmem [resolvable:$true] %s26_s12 }
   0x4   :  { %s144_s15 = scalar_lea.hbm %s281_s0, 256 }
   0x5   :  { %p145_p0 = scmp.ne.s32.totalorder %s281_s0, %s144_s15  ;;  %p148_p1 = scmp.lt.u32.totalorder %s144_s15, %s281_s0 }
   0x7   :  { %p150_p2 = pnand %p148_p1, %p145_p0 }
   0x9   :  { %153 = shalt.err (!%p150_p2)
}
   0xa   :  { %s154_s20 = scalar_lea.vmem %s17_s10, 256  ;;  %p159_p4 = scmp.lt.s32.totalorder %s17_s10, %s17_s10 }
   0xb   :  { %p155_p3 = scmp.ne.s32.totalorder %s17_s10, %s154_s20  ;;  %p160_p5 = scmp.lt.s32.totalorder %s154_s20, %s154_s20 }
   0xd   :  { %p161_p6 = por %p160_p5, %p159_p4 }
   0xf   :  { %p162_p7 = pnand %p161_p6, %p155_p3 }
  0x11   :  { %165 = shalt.err (!%p162_p7)
}
  0x12   :  { %19 = dma.hbm_to_vmem [thread:$0]  %s281_s0, 256, %s17_s10, [#allocation7]  }
  0x13   :  { %s166_s25 = scalar_lea.hbm %s282_s1, 256 }
  0x14   :  { %p167_p8 = scmp.ne.s32.totalorder %s282_s1, %s166_s25  ;;  %p170_p9 = scmp.lt.u32.totalorder %s166_s25, %s282_s1 }
  0x16   :  { %p172_p10 = pnand %p170_p9, %p167_p8 }
  0x18   :  { %175 = shalt.err (!%p172_p10)
}
  0x19   :  { %s176_s30 = scalar_lea.vmem %s27_s12, 256  ;;  %p181_p12 = scmp.lt.s32.totalorder %s27_s12, %s27_s12 }
  0x1a   :  { %p177_p11 = scmp.ne.s32.totalorder %s27_s12, %s176_s30  ;;  %p182_p13 = scmp.lt.s32.totalorder %s176_s30, %s176_s30 }
  0x1c   :  { %p183_p0 = por %p182_p13, %p181_p12 }
  0x1e   :  { %p184_p1 = pnand %p183_p0, %p177_p11 }
  0x20   :  { %187 = shalt.err (!%p184_p1)
}
  0x21   :  { %29 = dma.hbm_to_vmem [thread:$0]  %s282_s1, 256, %s27_s12, [#allocation10]  }
  0x22   :  { %210 = dma.done.wait [#allocation7], 256  }
  0x23   :  { %211 = vsyncadd [#allocation7], 4294967040 }
  0x24   :  { %212 = dma.done.wait [#allocation10], 256  }
  0x25   :  { %213 = vsyncadd [#allocation10], 4294967040  ;;  %vm40_vm0 = vcmask 7168   ;;  %v218_v0 = vmov -inf   ;;  %v45_v1 = vld [vmem:[#allocation6] sm:$0xff]  ;;  %v46_v2 = vld [vmem:[#allocation6 + $0x8] sm:$0xff] }
  0x26   :  { %41 = vst.msk [vmem:[#allocation2] sm:$0xff] %vm40_vm0, %v218_v0  ;;  %v47_v3 = vld [vmem:[#allocation9] sm:$0xff]  ;;  %v50_v4 = vmax.f32 %v45_v1, %v46_v2  ;;  %v48_v5 = vld [vmem:[#allocation9 + $0x8] sm:$0xff]  ;;  %v219_v22 = vmov 0.0   ;;  %s220_s1 = smov [#allocation11]   ;;  %vm113_vm1 = vcmask 0  }
  0x27   :  { %v56_v6 = vsub.f32 1.1, %v47_v3  ;;  %v57_v7 = vsub.f32 1.1, %v48_v5  ;;  %v79_v9 = vmul.f32 %v47_v3, %v47_v3  ;;  %v80_v10 = vmul.f32 %v48_v5, %v48_v5  ;;  %43 = vst.msk [vmem:[#allocation4] sm:$0xff] %vm40_vm0, %v219_v22  ;;  %42 = vst.msk [vmem:[#allocation3] sm:$0xff] %vm40_vm0, %v219_v22 }
  0x28   :  { %51 = vmax.xlane.f32.xlu0 %v50_v4  ;;  %44 = vst.msk [vmem:[#allocation5] sm:$0xff] %vm40_vm0, %v219_v22  ;;  %s121_s4 = sshll.u32 %s220_s1, 4  ;;  %s122_s4 = int_to_ptr.vmem [resolvable:$true] %s121_s4 }
  0x29   :  { %138 = vrcp.f32 %v56_v6  ;;  %s188_s6 = scalar_lea.vmem %s122_s4, 16  ;;  %s192_s7 = scalar_lea.vmem %s122_s4, 32 }
  0x2a   :  { %140 = vrcp.f32 %v57_v7  ;;  %p189_p2 = scmp.ne.s32.totalorder %s122_s4, %s188_s6  ;;  %p193_p3 = scmp.lt.s32.totalorder %s122_s4, %s122_s4 }
  0x2b   :  { %p194_p4 = scmp.lt.s32.totalorder %s192_s7, %s188_s6 }
  0x2d   :  { %v49_v24 = vld [vmem:[#allocation2] sm:$0xff]  ;;  %p195_p5 = por %p194_p4, %p193_p3 }
  0x2e   :  { %v70_v28 = vld [vmem:[#allocation4] sm:$0xff]  ;;  %v62_v29 = vld [vmem:[#allocation3] sm:$0xff] }
  0x2f   :  { %v78_v34 = vld [vmem:[#allocation5] sm:$0xff]  ;;  %p196_p6 = pnand %p195_p5, %p189_p2 }
  0x33   :  { %v139_v8 = vpop.eup %138 }
  0x34   :  { %v141_v11 = vpop.eup %140  ;;  %v60_v12 = vmul.f32 %v139_v8, %v45_v1  ;;  %v81_v18 = vmul.f32 %v139_v8, %v79_v9 }
  0x35   :  { %v61_v13 = vmul.f32 %v141_v11, %v46_v2  ;;  %v82_v19 = vmul.f32 %v141_v11, %v80_v10 }
  0x36   :  { %v71_v14 = vmul.f32 %v60_v12, %v47_v3  ;;  %v63_v15 = vmul.f32 %v60_v12, %v45_v1 }
  0x37   :  { %v72_v16 = vmul.f32 %v61_v13, %v48_v5  ;;  %v64_v17 = vmul.f32 %v61_v13, %v46_v2  ;;  %v83_v23 = vadd.f32 %v82_v19, %v81_v18 }
  0x39   :  { %v73_v20 = vadd.f32 %v72_v16, %v71_v14  ;;  %v65_v21 = vadd.f32 %v64_v17, %v63_v15 }
  0x3b   :  { %74 = vadd.xlane.f32.xlu1 %v73_v20  ;;  %66 = vadd.xlane.f32.xlu0 %v65_v21 }
  0x3f   :  { %84 = vadd.xlane.f32.xlu1 %v83_v23 }
  0xb5   :  { %v52_v25 = vpop.xlane.xlu0 %51 }
  0xb6   :  { %v53_v26 = vmax.f32 %v49_v24, %v52_v25 }
  0xb8   :  { %55 = vst.msk [vmem:[#allocation2] sm:$0xff] %vm40_vm0, %v53_v26 }
  0xbf   :  { %v91_v27 = vld [vmem:[#allocation2] sm:$0xff] }
  0xc0   :  { %142 = vrcp.f32 %v91_v27 }
  0xc8   :  { %v75_v30 = vpop.xlane.xlu1 %74  ;;  %v67_v31 = vpop.xlane.xlu0 %66 }
  0xc9   :  { %v76_v32 = vadd.f32 %v75_v30, %v70_v28  ;;  %v68_v33 = vadd.f32 %v67_v31, %v62_v29 }
  0xca   :  { %v143_v37 = vpop.eup %142 }
  0xcb   :  { %77 = vst.msk [vmem:[#allocation4] sm:$0xff] %vm40_vm0, %v76_v32  ;;  %69 = vst.msk [vmem:[#allocation3] sm:$0xff] %vm40_vm0, %v68_v33 }
  0xcc   :  { %v85_v35 = vpop.xlane.xlu1 %84 }
  0xcd   :  { %v86_v36 = vadd.f32 %v85_v35, %v78_v34 }
  0xcf   :  { %87 = vst.msk [vmem:[#allocation5] sm:$0xff] %vm40_vm0, %v86_v36 }
  0xd2   :  { %v94_v38 = vld [vmem:[#allocation3] sm:$0xff]  ;;  %v96_v39 = vld [vmem:[#allocation4] sm:$0xff] }
  0xd3   :  { %v95_v40 = vmul.f32 %v143_v37, %v94_v38  ;;  %v97_v41 = vmul.f32 2.0, %v96_v39 }
  0xd5   :  { %v98_v42 = vsub.f32 %v95_v40, %v97_v41 }
  0xd6   :  { %v100_v43 = vld [vmem:[#allocation5] sm:$0xff] }
  0xd7   :  { %v99_v44 = vmul.f32 %v143_v37, %v98_v42 }
  0xd9   :  { %v101_v45 = vadd.f32 %v100_v43, %v99_v44 }
  0xdb   :  { %v102_v46 = vsel %vm40_vm0, %v101_v45, 0.0 }
  0xdc   :  { %103 = vadd.xlane.f32.xlu0 %v102_v46 }
 0x169   :  { %v104_v47 = vpop.xlane.xlu0 %103 }
 0x16a   :  { %v105_v48 = vrot.slane %v104_v47, 4 }
 0x16c   :  { %v106_v49 = vadd.f32 %v105_v48, %v104_v47 }
 0x16e   :  { %v107_v50 = vrot.slane %v106_v49, 2 }
 0x170   :  { %v108_v51 = vadd.f32 %v107_v50, %v106_v49 }
 0x172   :  { %v109_v52 = vrot.slane %v108_v51, 1 }
 0x174   :  { %v110_v53 = vadd.f32 %v109_v52, %v108_v51 }
 0x176   :  { %131 = vpush %v110_v53 }
 0x1a7   :  { %s132_s5 = spop %131 }
 0x1a8   :  { %v112_v54 = vstv %s132_s5 }
 0x1a9   :  { %114 = vst.msk [vmem:[#allocation11] sm:$0x1] %vm113_vm1, %v112_v54 }
 0x1aa   :  { %199 = shalt.err (!%p196_p6)
}
 0x1ab   :  { %s200_s10 = scalar_lea.hbm %s283_s2, 16 }
 0x1ac   :  { %p201_p7 = scmp.ne.s32.totalorder %s283_s2, %s200_s10  ;;  %p204_p8 = scmp.lt.u32.totalorder %s200_s10, %s283_s2 }
 0x1ae   :  { %p206_p9 = pnand %p204_p8, %p201_p7 }
 0x1b0   :  { %209 = shalt.err (!%p206_p9)
}
 0x1b1   :  { %124 = dma.vmem_to_hbm [thread:$0]  %s122_s4, 16, %s283_s2, [#allocation8]  }
 0x1b2   :  { %214 = dma.done.wait [#allocation8], 16  }
 0x1b3   :  { %215 = vsyncadd [#allocation8], 4294967280 }
 0x1b4   :  { %128 = vsyncpa [#allocation7], 1 }
 0x1b5   :  { %129 = vsyncpa [#allocation10], 1 }
 0x1b6   :  { %130 = vsyncpa [#allocation8], 1 }

</bundles_post_ra>
